<compile_context>
chip_gen: v7x
topology: tpu7x:2x2x1
jax: 0.10.0
libtpu: 0.0.40
codegen_flags: <defaults>
</compile_context>

<pallas_src>
import functools

import jax
import jax.numpy as jnp
from jax.experimental import pallas as pl
from jax.experimental.pallas import tpu as pltpu


def _round_up(x: int, m: int) -> int:
    return ((x + m - 1) // m) * m


def _vmem_limit_bytes() -> int:
    """Generation-aware VMEM budget with headroom below physical capacity."""
    try:
        cap = int(pltpu.get_tpu_info().vmem_capacity_bytes)
    except Exception:
        cap = 128 * 1024 * 1024  # v5e/v6e default
    return min((cap * 3) // 4, 100 * 1024 * 1024)


def _fused_mlp_kernel(x_ref, w_ref, b_ref, o_ref, *, num_hidden: int):
    """Fused MLP forward on VMEM-resident, zero-padded tiles.

    x_ref: (B, P) f32        padded input activations
    w_ref: (L, P, P) bf16    packed transposed weights (L = num_hidden + 1)
    b_ref: (H, 1, P) f32     packed hidden-layer biases
    o_ref: (B, P) f32        padded output (valid cols sliced wrapper-side)
    """
    h = x_ref[...]  # f32 (B, P)
    for li in range(num_hidden):
        # bf16 MXU matmul, f32 accumulate; bias + ReLU in f32.
        acc = jnp.dot(
            h.astype(jnp.bfloat16), w_ref[li], preferred_element_type=jnp.float32
        )
        h = jnp.maximum(acc + b_ref[li], 0.0)

    # Final layer: no bias, no ReLU.
    y = jnp.dot(
        h.astype(jnp.bfloat16), w_ref[num_hidden], preferred_element_type=jnp.float32
    )
    o_ref[...] = y.astype(o_ref.dtype)


def fused_mlp(x, w_packed, b_packed, *, num_hidden: int, output_size: int):
    """x: (B, in_features) f32. Returns (B, output_size) f32."""
    B = x.shape[0]
    P = w_packed.shape[-1]

    # Pad input activations to the common padded width P (zeros are inert).
    x_pad = jnp.zeros((B, P), jnp.float32).at[:, : x.shape[1]].set(x)

    kernel = functools.partial(_fused_mlp_kernel, num_hidden=num_hidden)
    vmem_spec = pl.BlockSpec(memory_space=pltpu.MemorySpace.VMEM)

    y_pad = pl.pallas_call(
        kernel,
        out_shape=jax.ShapeDtypeStruct((B, P), jnp.float32),
        in_specs=[vmem_spec, vmem_spec, vmem_spec],
        out_specs=vmem_spec,
        compiler_params=pltpu.CompilerParams(
            vmem_limit_bytes=_vmem_limit_bytes(),
        ),
    )(x_pad, w_packed, b_packed)

    # Kernel stores a lane-dense (B, 128k) slab; slice the valid columns here.
    return y_pad[:, :output_size]


class SimpleModelPallas:
    """JAX/Pallas port of the PyTorch SimpleModel (whole forward = one kernel)."""

    def __init__(self, input_size, output_size, fc_sizes, key):
        self.input_size = int(input_size)
        self.output_size = int(output_size)
        self.num_hidden = len(fc_sizes)

        # Common padded width for activations and both weight dims.
        max_dim = max([input_size, output_size] + list(fc_sizes))
        self.padded_dim = max(128, _round_up(max_dim, 128))
        P = self.padded_dim
        L = self.num_hidden + 1
        H = max(1, self.num_hidden)  # keep a non-empty bias buffer even if H == 0

        # f32 master params (PyTorch nn.Linear init), kept for the reference.
        self.params_f32 = []
        last = input_size
        for s in fc_sizes:
            key, kw, kb = jax.random.split(key, 3)
            bound = 1.0 / float(jnp.sqrt(float(last)))
            w_t = jax.random.uniform(kw, (last, s), jnp.float32, -bound, bound)
            b = jax.random.uniform(kb, (s,), jnp.float32, -bound, bound)
            self.params_f32.append((w_t, b))
            last = s
        key, kw = jax.random.split(key)
        bound = 1.0 / float(jnp.sqrt(float(last)))
        self.last_w_t_f32 = jax.random.uniform(
            kw, (last, output_size), jnp.float32, -bound, bound
        )  # final layer: bias=False

        # Pack everything into 2 buffers (built once at init).
        w_packed = jnp.zeros((L, P, P), jnp.float32)
        b_packed = jnp.zeros((H, 1, P), jnp.float32)
        for li, (w_t, b) in enumerate(self.params_f32):
            k, n = w_t.shape
            w_packed = w_packed.at[li, :k, :n].set(w_t)
            b_packed = b_packed.at[li, 0, :n].set(b)
        k, n = self.last_w_t_f32.shape
        w_packed = w_packed.at[self.num_hidden, :k, :n].set(self.last_w_t_f32)

        self.w_packed = w_packed.astype(jnp.bfloat16)  # bf16 MXU inputs
        self.b_packed = b_packed                        # f32 bias add

    def __call__(self, x):
        return fused_mlp(
            x,
            self.w_packed,
            self.b_packed,
            num_hidden=self.num_hidden,
            output_size=self.output_size,
        )


def _reference(model, x):
    # pure-JAX f32 reference (matches PyTorch semantics)
    for w_t, b in model.params_f32:
        x = jnp.maximum(x @ w_t + b, 0.0)
    return x @ model.last_w_t_f32


if __name__ == "__main__":
    key = jax.random.PRNGKey(0)
    key, kx, kp = jax.random.split(key, 3)

    batch = 8
    input_size = 32
    fc_sizes = [64, 32]
    output_size = 16

    x = jax.random.normal(kx, (batch, input_size), jnp.float32)
    model = SimpleModelPallas(input_size, output_size, fc_sizes, kp)

    out = jax.block_until_ready(model(x))

    ref = _reference(model, x)
    assert out.shape == (batch, output_size)
    # bf16 matmul inputs (f32 accumulate) -> loosened tolerance vs f32 reference.
    assert jnp.allclose(out, ref, atol=5e-2, rtol=5e-2)

    print("KERNEL_OK")
</pallas_src>

<mosaic_0001>
module attributes {stable_mosaic.version = 11 : i64} {
  func.func @_fused_mlp_kernel(%arg0: memref<8x128xf32, #tpu.memory_space<vmem>>, %arg1: memref<3x128x128xbf16, #tpu.memory_space<vmem>>, %arg2: memref<2x1x128xf32, #tpu.memory_space<vmem>>, %arg3: memref<8x128xf32, #tpu.memory_space<vmem>>) attributes {dimension_semantics = [], scalar_prefetch = 0 : i64, scratch_operands = 0 : i64, tpu.core_type = #tpu.core_type<tc>} {
    %c0 = arith.constant 0 : index
    %c0_0 = arith.constant 0 : index
    %0 = vector.load %arg0[%c0, %c0_0] : memref<8x128xf32, #tpu.memory_space<vmem>>, vector<8x128xf32>
    %1 = arith.truncf %0 : vector<8x128xf32> to vector<8x128xbf16>
    %c0_1 = arith.constant 0 : index
    %c0_2 = arith.constant 0 : index
    %c0_3 = arith.constant 0 : index
    %2 = vector.load %arg1[%c0_1, %c0_2, %c0_3] : memref<3x128x128xbf16, #tpu.memory_space<vmem>>, vector<1x128x128xbf16>
    %3 = vector.shape_cast %2 : vector<1x128x128xbf16> to vector<128x128xbf16>
    %cst = arith.constant dense<0.000000e+00> : vector<8x128xf32>
    %4 = tpu.matmul %1, %3, %cst {dimension_numbers = #tpu.dot_dimension_numbers<[1], [0], [0], [1], [0, 0, 1, 1], [], []>} : vector<8x128xbf16>, vector<128x128xbf16>, vector<8x128xf32> -> vector<8x128xf32>
    %c0_4 = arith.constant 0 : index
    %c0_5 = arith.constant 0 : index
    %c0_6 = arith.constant 0 : index
    %5 = vector.load %arg2[%c0_4, %c0_5, %c0_6] : memref<2x1x128xf32, #tpu.memory_space<vmem>>, vector<1x1x128xf32>
    %6 = vector.shape_cast %5 : vector<1x1x128xf32> to vector<1x128xf32>
    %7 = vector.broadcast %6 : vector<1x128xf32> to vector<8x128xf32>
    %8 = arith.addf %4, %7 : vector<8x128xf32>
    %cst_7 = arith.constant 0.000000e+00 : f32
    %9 = vector.broadcast %cst_7 : f32 to vector<8x128xf32>
    %10 = arith.maximumf %8, %9 : vector<8x128xf32>
    %11 = arith.truncf %10 : vector<8x128xf32> to vector<8x128xbf16>
    %c1 = arith.constant 1 : index
    %c0_8 = arith.constant 0 : index
    %c0_9 = arith.constant 0 : index
    %12 = vector.load %arg1[%c1, %c0_8, %c0_9] : memref<3x128x128xbf16, #tpu.memory_space<vmem>>, vector<1x128x128xbf16>
    %13 = vector.shape_cast %12 : vector<1x128x128xbf16> to vector<128x128xbf16>
    %cst_10 = arith.constant dense<0.000000e+00> : vector<8x128xf32>
    %14 = tpu.matmul %11, %13, %cst_10 {dimension_numbers = #tpu.dot_dimension_numbers<[1], [0], [0], [1], [0, 0, 1, 1], [], []>} : vector<8x128xbf16>, vector<128x128xbf16>, vector<8x128xf32> -> vector<8x128xf32>
    %c1_11 = arith.constant 1 : index
    %c0_12 = arith.constant 0 : index
    %c0_13 = arith.constant 0 : index
    %15 = vector.load %arg2[%c1_11, %c0_12, %c0_13] : memref<2x1x128xf32, #tpu.memory_space<vmem>>, vector<1x1x128xf32>
    %16 = vector.shape_cast %15 : vector<1x1x128xf32> to vector<1x128xf32>
    %17 = vector.broadcast %16 : vector<1x128xf32> to vector<8x128xf32>
    %18 = arith.addf %14, %17 : vector<8x128xf32>
    %cst_14 = arith.constant 0.000000e+00 : f32
    %19 = vector.broadcast %cst_14 : f32 to vector<8x128xf32>
    %20 = arith.maximumf %18, %19 : vector<8x128xf32>
    %21 = arith.truncf %20 : vector<8x128xf32> to vector<8x128xbf16>
    %c2 = arith.constant 2 : index
    %c0_15 = arith.constant 0 : index
    %c0_16 = arith.constant 0 : index
    %22 = vector.load %arg1[%c2, %c0_15, %c0_16] : memref<3x128x128xbf16, #tpu.memory_space<vmem>>, vector<1x128x128xbf16>
    %23 = vector.shape_cast %22 : vector<1x128x128xbf16> to vector<128x128xbf16>
    %cst_17 = arith.constant dense<0.000000e+00> : vector<8x128xf32>
    %24 = tpu.matmul %21, %23, %cst_17 {dimension_numbers = #tpu.dot_dimension_numbers<[1], [0], [0], [1], [0, 0, 1, 1], [], []>} : vector<8x128xbf16>, vector<128x128xbf16>, vector<8x128xf32> -> vector<8x128xf32>
    %c0_18 = arith.constant 0 : index
    %c0_19 = arith.constant 0 : index
    %25 = vector.load %arg3[%c0_18, %c0_19] : memref<8x128xf32, #tpu.memory_space<vmem>>, vector<8x128xf32>
    tpu.vector_store %arg3[%c0_18, %c0_19], %24 {strides = array<i32>} : memref<8x128xf32, #tpu.memory_space<vmem>>, vector<8x128xf32>,
    return
  }
}

</mosaic_0001>

<bundles_post_ra>
// kernel: tpu_custom_call.1
= control target key start
LH: loop header
LB: loop body
LE: loop exit
PB: predicated region body
PF: predicated region fallthrough
CT: control target
= control target key end

     0   :  { %8 = vsyncpa [#allocation3], 0  ;;  %s756_s0 = inlined_call_operand.hbm [shape: f32[8,128], index: 0, kind: input, shape index: {}]   ;;  %s757_s1 = inlined_call_operand.hbm [shape: bf16[3,128,128], index: 1, kind: input, shape index: {}]   ;;  %s758_s2 = inlined_call_operand.hbm [shape: f32[2,1,128], index: 2, kind: input, shape index: {}]   ;;  %s759_s3 = inlined_call_operand.hbm [shape: f32[8,128], index: 3, kind: output, shape index: {}]  }
   0x1   :  { %9 = vsyncpa [#allocation6], 0 }
   0x2   :  { %10 = vsyncpa [#allocation4], 0  ;;  %s648_s12 = smov [#allocation5]   ;;  %s554_s16 = scalar_lea.hbm %s757_s1, 3072 }
   0x3   :  { %s26_s13 = sshll.u32 %s648_s12, 4  ;;  %p555_p0 = scmp.ne.s32.totalorder %s757_s1, %s554_s16  ;;  %s27_s13 = int_to_ptr.vmem [resolvable:$true] %s26_s13 }
   0x4   :  { %p558_p1 = scmp.lt.u32.totalorder %s554_s16, %s757_s1 }
   0x6   :  { %p560_p2 = pnand %p558_p1, %p555_p0 }
   0x8   :  { %563 = shalt.err (!%p560_p2)
}
   0x9   :  { %s564_s21 = scalar_lea.vmem %s27_s13, 3072  ;;  %p569_p4 = scmp.lt.s32.totalorder %s27_s13, %s27_s13 }
   0xa   :  { %p565_p3 = scmp.ne.s32.totalorder %s27_s13, %s564_s21  ;;  %p570_p5 = scmp.lt.s32.totalorder %s564_s21, %s564_s21 }
   0xc   :  { %p571_p6 = por %p570_p5, %p569_p4 }
   0xe   :  { %p572_p7 = pnand %p571_p6, %p565_p3 }
  0x10   :  { %575 = shalt.err (!%p572_p7)
}
  0x11   :  { %s649_s22 = smov 64   ;;  %s650_s23 = smov 4  }
  0x12   :  { %32 = dma.hbm_to_vmem [thread:$0]  %s757_s1, 3072, %s27_s13, [#allocation6], %s649_s22, %s649_s22, %s650_s23  }
  0x13   :  { %s651_s26 = smov [#allocation2]   ;;  %s652_s28 = smov [#allocation7]  }
  0x14   :  { %s17_s27 = sshll.u32 %s651_s26, 4  ;;  %s38_s29 = sshll.u32 %s652_s28, 4  ;;  %s18_s27 = int_to_ptr.vmem [resolvable:$true] %s17_s27  ;;  %s39_s29 = int_to_ptr.vmem [resolvable:$true] %s38_s29 }
  0x15   :  { %s576_s5 = scalar_lea.hbm %s756_s0, 128 }
  0x16   :  { %p577_p8 = scmp.ne.s32.totalorder %s756_s0, %s576_s5  ;;  %p580_p9 = scmp.lt.u32.totalorder %s576_s5, %s756_s0 }
  0x18   :  { %p582_p10 = pnand %p580_p9, %p577_p8 }
  0x1a   :  { %585 = shalt.err (!%p582_p10)
}
  0x1b   :  { %s586_s1 = scalar_lea.vmem %s18_s27, 128  ;;  %p591_p12 = scmp.lt.s32.totalorder %s18_s27, %s18_s27 }
  0x1c   :  { %p587_p11 = scmp.ne.s32.totalorder %s18_s27, %s586_s1  ;;  %p592_p13 = scmp.lt.s32.totalorder %s586_s1, %s586_s1 }
  0x1e   :  { %p593_p0 = por %p592_p13, %p591_p12 }
  0x20   :  { %p594_p1 = pnand %p593_p0, %p587_p11 }
  0x22   :  { %597 = shalt.err (!%p594_p1)
}
  0x23   :  { %20 = dma.hbm_to_vmem [thread:$0]  %s756_s0, 128, %s18_s27, [#allocation3]  }
  0x24   :  { %s598_s14 = scalar_lea.hbm %s758_s2, 32 }
  0x25   :  { %p599_p2 = scmp.ne.s32.totalorder %s758_s2, %s598_s14  ;;  %p602_p3 = scmp.lt.u32.totalorder %s598_s14, %s758_s2 }
  0x27   :  { %p604_p4 = pnand %p602_p3, %p599_p2 }
  0x29   :  { %607 = shalt.err (!%p604_p4)
}
  0x2a   :  { %s608_s19 = scalar_lea.vmem %s39_s29, 32  ;;  %p613_p6 = scmp.lt.s32.totalorder %s39_s29, %s39_s29 }
  0x2b   :  { %p609_p5 = scmp.ne.s32.totalorder %s39_s29, %s608_s19  ;;  %p614_p7 = scmp.lt.s32.totalorder %s608_s19, %s608_s19 }
  0x2d   :  { %p615_p8 = por %p614_p7, %p613_p6 }
  0x2f   :  { %p616_p9 = pnand %p615_p8, %p609_p5 }
  0x31   :  { %619 = shalt.err (!%p616_p9)
}
  0x32   :  { %s653_s0 = smov 16   ;;  %s654_s20 = smov 1  }
  0x33   :  { %44 = dma.hbm_to_vmem [thread:$0]  %s758_s2, 32, %s39_s29, [#allocation6], %s653_s0, %s653_s0, %s654_s20  }
  0x34   :  { %642 = dma.done.wait [#allocation3], 128  }
  0x35   :  { %643 = vsyncadd [#allocation3], 4294967168 }
  0x36   :  { %644 = dma.done.wait [#allocation6], 3104  }
  0x37   :  { %645 = vsyncadd [#allocation6], 4294964192  ;;  %v655_v0 = vmov 0.0   ;;  %vm656_vm0 = vmmov 0   ;;  %v530_v1 = vld [vmem:[#allocation5] sm:$0xff]   ;;  %v531_v2 = vld [vmem:[#allocation5 + $0x8] sm:$0xff]  }
  0x38   :  { %460 = vmatprep.subr.bf16.mxu0 %v655_v0  ;;  %476 = vmatprep.mubr.msk.bf16.mxu0 %vm656_vm0, %v655_v0  ;;  %v532_v3 = vld [vmem:[#allocation5 + $0x10] sm:$0xff]   ;;  %v538_v4 = vld [vmem:[#allocation5 + $0x40] sm:$0xff]   ;;  %v533_v5 = vld [vmem:[#allocation5 + $0x18] sm:$0xff]   ;;  %s657_s2 = smov [#allocation8]  }
  0x39   :  { %480 = vmatprep.subr.bf16.mxu1 %v655_v0  ;;  %496 = vmatprep.mubr.msk.bf16.mxu1 %vm656_vm0, %v655_v0  ;;  %v539_v6 = vld [vmem:[#allocation5 + $0x48] sm:$0xff]   ;;  %v534_v7 = vld [vmem:[#allocation5 + $0x20] sm:$0xff]   ;;  %v540_v8 = vld [vmem:[#allocation5 + $0x50] sm:$0xff]   ;;  %s397_s23 = sshll.u32 %s657_s2, 4  ;;  %s398_s23 = int_to_ptr.vmem [resolvable:$true] %s397_s23 }
  0x3a   :  { %461 = vmatpush3.bf16.msra.mxu0 %v530_v1  ;;  %481 = vmatpush3.bf16.msra.mxu1 %v538_v4  ;;  %v535_v9 = vld [vmem:[#allocation5 + $0x28] sm:$0xff]   ;;  %v541_v10 = vld [vmem:[#allocation5 + $0x58] sm:$0xff]   ;;  %v536_v11 = vld [vmem:[#allocation5 + $0x30] sm:$0xff]   ;;  %s620_s24 = scalar_lea.vmem %s398_s23, 128  ;;  %p625_p11 = scmp.lt.s32.totalorder %s398_s23, %s398_s23 }
  0x3b   :  { %462 = vmatprep.subr.bf16.mxu0 %v655_v0  ;;  %482 = vmatprep.subr.bf16.mxu1 %v655_v0  ;;  %v542_v12 = vld [vmem:[#allocation5 + $0x60] sm:$0xff]   ;;  %v537_v13 = vld [vmem:[#allocation5 + $0x38] sm:$0xff]   ;;  %v543_v15 = vld [vmem:[#allocation5 + $0x68] sm:$0xff]   ;;  %p621_p10 = scmp.ne.s32.totalorder %s398_s23, %s620_s24  ;;  %p626_p12 = scmp.lt.s32.totalorder %s620_s24, %s620_s24 }
  0x3c   :  { %v55_v14 = vld [vmem:[#allocation2] sm:$0xff]  ;;  %v544_v17 = vld [vmem:[#allocation5 + $0x70] sm:$0xff]   ;;  %v546_v19 = vld [vmem:[#allocation5 + $0x80] sm:$0xff]  }
  0x3d   :  { %v56_v16 = vpack.c.bf16 %v55_v14, %v55_v14  ;;  %v545_v18 = vld [vmem:[#allocation5 + $0x78] sm:$0xff]   ;;  %v547_v20 = vld [vmem:[#allocation5 + $0x88] sm:$0xff]   ;;  %v548_v21 = vld [vmem:[#allocation5 + $0x90] sm:$0xff]   ;;  %p627_p13 = por %p626_p12, %p625_p11 }
  0x3e   :  { %463 = vmatpush3.bf16.msra.mxu0 %v531_v2  ;;  %483 = vmatpush3.bf16.msra.mxu1 %v539_v6  ;;  %v549_v22 = vld [vmem:[#allocation5 + $0x98] sm:$0xff]   ;;  %v550_v23 = vld [vmem:[#allocation5 + $0xa0] sm:$0xff]   ;;  %v551_v24 = vld [vmem:[#allocation5 + $0xa8] sm:$0xff]  }
  0x3f   :  { %464 = vmatprep.subr.bf16.mxu0 %v655_v0  ;;  %484 = vmatprep.subr.bf16.mxu1 %v655_v0  ;;  %v407_v25 = vld [vmem:[#allocation7] ss:$0 sm:$0xff]  ;;  %v552_v33 = vld [vmem:[#allocation5 + $0xb0] sm:$0xff]   ;;  %v553_v34 = vld [vmem:[#allocation5 + $0xb8] sm:$0xff]   ;;  %p628_p0 = pnand %p627_p13, %p621_p10 }
  0x40   :  { %v416_v35 = vld [vmem:[#allocation7 + $0x1] ss:$0 sm:$0xff] }
  0x42   :  { %465 = vmatpush3.bf16.msra.mxu0 %v532_v3  ;;  %485 = vmatpush3.bf16.msra.mxu1 %v540_v8 }
  0x43   :  { %466 = vmatprep.subr.bf16.mxu0 %v655_v0  ;;  %486 = vmatprep.subr.bf16.mxu1 %v655_v0 }
  0x46   :  { %467 = vmatpush3.bf16.msra.mxu0 %v533_v5  ;;  %487 = vmatpush3.bf16.msra.mxu1 %v541_v10 }
  0x47   :  { %468 = vmatprep.subr.bf16.mxu0 %v655_v0  ;;  %488 = vmatprep.subr.bf16.mxu1 %v655_v0 }
  0x4a   :  { %469 = vmatpush3.bf16.msra.mxu0 %v534_v7  ;;  %489 = vmatpush3.bf16.msra.mxu1 %v542_v12 }
  0x4b   :  { %470 = vmatprep.subr.bf16.mxu0 %v655_v0  ;;  %490 = vmatprep.subr.bf16.mxu1 %v655_v0 }
  0x4e   :  { %471 = vmatpush3.bf16.msra.mxu0 %v535_v9  ;;  %491 = vmatpush3.bf16.msra.mxu1 %v543_v15 }
  0x4f   :  { %472 = vmatprep.subr.bf16.mxu0 %v655_v0  ;;  %492 = vmatprep.subr.bf16.mxu1 %v655_v0 }
  0x52   :  { %473 = vmatpush3.bf16.msra.mxu0 %v536_v11  ;;  %493 = vmatpush3.bf16.msra.mxu1 %v544_v17 }
  0x53   :  { %474 = vmatprep.subr.bf16.mxu0 %v655_v0  ;;  %494 = vmatprep.subr.bf16.mxu1 %v655_v0 }
  0x56   :  { %475 = vmatpush3.bf16.msra.mxu0 %v537_v13  ;;  %495 = vmatpush3.bf16.msra.mxu1 %v545_v18 }
  0x57   :  { %500 = vmatprep.subr.bf16.mxu0 %v655_v0 }
  0x59   :  { %477 = vmatmul.mubr.bf16.vlgmr.msra.gmra.mrb[0].mxu0 %v56_v16 }
  0x5a   :  { %516 = vmatprep.mubr.msk.bf16.mxu0 %vm656_vm0, %v655_v0  ;;  %501 = vmatpush3.bf16.msra.mxu0 %v546_v19 }
  0x5b   :  { %502 = vmatprep.subr.bf16.mxu0 %v655_v0 }
  0x5e   :  { %503 = vmatpush3.bf16.msra.mxu0 %v547_v20 }
  0x5f   :  { %504 = vmatprep.subr.bf16.mxu0 %v655_v0 }
  0x62   :  { %505 = vmatpush3.bf16.msra.mxu0 %v548_v21 }
  0x63   :  { %506 = vmatprep.subr.bf16.mxu0 %v655_v0 }
  0x66   :  { %507 = vmatpush3.bf16.msra.mxu0 %v549_v22 }
  0x67   :  { %508 = vmatprep.subr.bf16.mxu0 %v655_v0 }
  0x6a   :  { %509 = vmatpush3.bf16.msra.mxu0 %v550_v23 }
  0x6b   :  { %510 = vmatprep.subr.bf16.mxu0 %v655_v0 }
  0x6e   :  { %511 = vmatpush3.bf16.msra.mxu0 %v551_v24 }
  0x6f   :  { %512 = vmatprep.subr.bf16.mxu0 %v655_v0 }
  0x72   :  { %513 = vmatpush3.bf16.msra.mxu0 %v552_v33 }
  0x73   :  { %514 = vmatprep.subr.bf16.mxu0 %v655_v0 }
  0x76   :  { %515 = vmatpush3.bf16.msra.mxu0 %v553_v34 }
 0x12c   :  { %v162_v26 = vpop.f32.mrb[0].mxu0 }
 0x12d   :  { %v163_v27 = vadd.f32 %v407_v25, %v162_v26  ;;  %v478_v28 = vpop.f32.mrb[1].mxu0 }
 0x12e   :  { %v165_v29 = vpop.f32.mrb[2].mxu0 }
 0x12f   :  { %v168_v30 = vmax.f32 %v163_v27, 0.0  ;;  %v479_v31 = vpop.f32.mrb[3].mxu0 }
 0x131   :  { %v169_v32 = vpack.c.bf16 %v168_v30, %v168_v30 }
 0x133   :  { %497 = vmatmul.mubr.bf16.vlgmr.msra.gmra.mrb[0].mxu1 %v169_v32 }
 0x206   :  { %v277_v36 = vpop.f32.mrb[0].mxu1 }
 0x207   :  { %v278_v37 = vadd.f32 %v416_v35, %v277_v36  ;;  %v498_v38 = vpop.f32.mrb[1].mxu1 }
 0x208   :  { %v280_v39 = vpop.f32.mrb[2].mxu1 }
 0x209   :  { %v283_v40 = vmax.f32 %v278_v37, 0.0  ;;  %v499_v41 = vpop.f32.mrb[3].mxu1 }
 0x20b   :  { %v284_v42 = vpack.c.bf16 %v283_v40, %v283_v40 }
 0x20d   :  { %517 = vmatmul.mubr.bf16.vlgmr.msra.gmra.mrb[4].mxu0 %v284_v42 }
 0x2e0   :  { %v384_v43 = vpop.f32.mrb[4].mxu0 }
 0x2e1   :  { %390 = vst [vmem:[#allocation8] sm:$0xff] %v384_v43  ;;  %v518_v44 = vpop.f32.mrb[5].mxu0 }
 0x2e2   :  { %v387_v45 = vpop.f32.mrb[6].mxu0 }
 0x2e3   :  { %631 = shalt.err (!%p628_p0)
}
 0x2e4   :  { %s632_s27 = scalar_lea.hbm %s759_s3, 128 }
 0x2e5   :  { %p633_p1 = scmp.ne.s32.totalorder %s759_s3, %s632_s27  ;;  %p636_p2 = scmp.lt.u32.totalorder %s632_s27, %s759_s3 }
 0x2e7   :  { %p638_p3 = pnand %p636_p2, %p633_p1 }
 0x2e9   :  { %641 = shalt.err (!%p638_p3)
}
 0x2ea   :  { %400 = dma.vmem_to_hbm [thread:$0]  %s398_s23, 128, %s759_s3, [#allocation4]   ;;  %v519_v46 = vpop.f32.mrb[7].mxu0 }
 0x2eb   :  { %646 = dma.done.wait [#allocation4], 128  }
 0x2ec   :  { %647 = vsyncadd [#allocation4], 4294967168 }
 0x2ed   :  { %404 = vsyncpa [#allocation3], 1 }
 0x2ee   :  { %405 = vsyncpa [#allocation6], 1 }
 0x2ef   :  { %406 = vsyncpa [#allocation4], 1 }

</bundles_post_ra>
